<compile_context>
chip_gen: v5e
topology: v5e:2x2
jax: 0.10.0
libtpu: 0.0.40
codegen_flags: <defaults>
</compile_context>

<pallas_src>
import math

import jax
import jax.numpy as jnp
from jax.experimental import pallas as pl
from jax.experimental.pallas import tpu as pltpu


def build_pe_2d(d_model: int, max_len: int = 32, temperature: float = 10000.0) -> jax.Array:
    """Replicates the PyTorch __init__ buffer exactly (float32).

    pe_2D[h, w, i] = pe_1D[h, i] + pe_1D[w, i]
    """
    assert d_model % 2 == 0, "d_model must be even"
    position = jnp.arange(max_len, dtype=jnp.float32)[:, None]          # (max_len, 1)
    dim_t = jnp.arange(0, d_model, 2, dtype=jnp.float32)                # (d_model/2,)
    div_term = jnp.exp(dim_t * (-math.log(temperature) / d_model))      # (d_model/2,)
    angles = position * div_term                                        # (max_len, d_model/2)
    pe_1d = jnp.zeros((max_len, d_model), dtype=jnp.float32)
    pe_1d = pe_1d.at[:, 0::2].set(jnp.sin(angles))
    pe_1d = pe_1d.at[:, 1::2].set(jnp.cos(angles))
    pe_2d = pe_1d[:, None, :] + pe_1d[None, :, :]                       # (max_len, max_len, d_model)
    return pe_2d


def _vmem_limit_and_budget():
    """Per-generation VMEM limit and tile-footprint budget (bytes)."""
    cap = None
    try:
        info = pltpu.get_tpu_info()
        cap = int(getattr(info, "vmem_capacity_bytes", 0)) or None
    except Exception:
        cap = None
    if cap is None:
        cap = 64 * 1024 * 1024               # conservative: v7x-class per-TC VMEM
    if cap >= 128 * 1024 * 1024:             # v5e / v6e: 128 MiB physical
        limit = 96 * 1024 * 1024
    else:                                    # v7x: 64 MiB per TensorCore
        limit = 48 * 1024 * 1024
    budget = limit - 8 * 1024 * 1024         # headroom for compiler-internal scratch
    return limit, budget


def _choose_row_tile(rows: int, rows_per_image: int,
                     pipelined_row_bytes: int, pe_bytes: int,
                     budget_bytes: int) -> int:
    """Pick the row-tile size for the flattened (batch*H, W*D) slab.

    Constraints:
      * tile divides `rows` exactly,
      * tile divides `rows_per_image` (tile never straddles an image boundary)
        or is a multiple of it (tile spans whole images),
      * tile is a multiple of 8 (sublane tiling) unless it is the full extent.
    Footprint budget counts double-buffered x + out tiles plus the
    double-buffered resident PE block.  Prefers an even step count >= 4
    (>= 2 pipelined steps per v7x TensorCore), then >= 2 steps, then the
    largest fitting tile.
    """
    def valid(t):
        if rows % t != 0:
            return False
        if rows_per_image % t != 0 and t % rows_per_image != 0:
            return False
        if t != rows and t % 8 != 0:
            return False
        return True

    def footprint(t):
        return 2 * t * pipelined_row_bytes + 2 * pe_bytes

    cands = [t for t in range(1, rows + 1) if valid(t)]        # always contains `rows`
    fitting = [t for t in cands if footprint(t) <= budget_bytes]
    if not fitting:
        # Degrade gracefully: smallest legal tile.  (For pathological shapes this
        # may still exceed the budget and the compiler will report VMEM OOM.)
        return min(cands)
    for pred in (lambda t: (rows // t) >= 4 and (rows // t) % 2 == 0,
                 lambda t: (rows // t) >= 2):
        sel = [t for t in fitting if pred(t)]
        if sel:
            return max(sel)
    return max(fitting)


def _make_kernel(tile_r: int, rows_per_image: int):
    """Build the add-PE kernel for the chosen tiling.

    All refs are lane-dense 2-D VMEM tiles:
      x_ref / o_ref : (tile_r, cols)
      pe_ref        : (rows_per_image, cols)  -- constant block index, resident.
    Math is done in fp32 (PE buffer is fp32, mirrors PyTorch type promotion),
    then cast to the output dtype.  Pure VPU elementwise.
    """
    if tile_r == rows_per_image:
        def kernel(x_ref, pe_ref, o_ref):
            o_ref[...] = (x_ref[...].astype(jnp.float32) + pe_ref[...]).astype(o_ref.dtype)
        return kernel

    if tile_r < rows_per_image:
        # tile_r divides rows_per_image: slice the resident PE block in-kernel
        # instead of re-DMAing a cycling PE block every grid step.
        def kernel(x_ref, pe_ref, o_ref):
            off = pl.multiple_of((pl.program_id(0) * tile_r) % rows_per_image, tile_r)
            o_ref[...] = (
                x_ref[...].astype(jnp.float32) + pe_ref[pl.ds(off, tile_r), :]
            ).astype(o_ref.dtype)
        return kernel

    # tile_r spans whole images: replicate the resident PE block in-kernel
    # (no wrapper-side jnp.tile, no inflated PE VMEM footprint).
    n_img = tile_r // rows_per_image

    def kernel(x_ref, pe_ref, o_ref):
        @pl.loop(0, n_img)
        def _(img):
            r0 = pl.multiple_of(img * rows_per_image, rows_per_image)
            o_ref[pl.ds(r0, rows_per_image), :] = (
                x_ref[pl.ds(r0, rows_per_image), :].astype(jnp.float32) + pe_ref[...]
            ).astype(o_ref.dtype)
    return kernel


def _forward(x: jax.Array, pe: jax.Array) -> jax.Array:
    """Forward pass of PositionalEncoding2D in eval mode.

    x:  (batch, height, width, d_model)
    pe: (max_len, max_len, d_model) float32 buffer from build_pe_2d().
    """
    batch, height, width, d_model = x.shape
    max_h, max_w, pe_d = pe.shape
    assert d_model == pe_d, "d_model mismatch between x and PE buffer"
    assert height <= max_h and width <= max_w, "input spatial dims exceed PE max_len"

    out_dtype = jnp.promote_types(x.dtype, pe.dtype)   # PyTorch promotion: fp32 buffer + x

    rows_per_image = height
    cols = width * d_model                 # lane axis; widest available lane extent.
    rows = batch * rows_per_image
    # NOTE: if cols % 128 != 0 the output stores are masked vst; padding the lane
    # axis would add HBM traffic to a purely bandwidth-bound op, so we accept it.

    x2 = x.reshape(rows, cols)
    pe2 = pe[:height, :width, :].reshape(rows_per_image, cols)   # keep fp32

    vmem_limit, budget = _vmem_limit_and_budget()
    pipelined_row_bytes = cols * (x2.dtype.itemsize + jnp.dtype(out_dtype).itemsize)
    pe_bytes = rows_per_image * cols * pe2.dtype.itemsize
    tile_r = _choose_row_tile(rows, rows_per_image, pipelined_row_bytes, pe_bytes, budget)
    grid = (rows // tile_r,)

    kernel = _make_kernel(tile_r, rows_per_image)

    # In-place update of the (reshaped, donated) input buffer when dtypes allow.
    alias = {0: 0} if out_dtype == x2.dtype else {}

    out2 = pl.pallas_call(
        kernel,
        out_shape=jax.ShapeDtypeStruct((rows, cols), out_dtype),
        grid_spec=pltpu.PrefetchScalarGridSpec(
            num_scalar_prefetch=0,
            grid=grid,
            in_specs=[
                pl.BlockSpec((tile_r, cols), lambda i: (i, 0)),
                # Whole PE table as a single constant-index block: DMA'd once,
                # stays resident in VMEM across every grid step.
                pl.BlockSpec((rows_per_image, cols), lambda i: (0, 0)),
            ],
            out_specs=pl.BlockSpec((tile_r, cols), lambda i: (i, 0)),
        ),
        compiler_params=pltpu.CompilerParams(
            dimension_semantics=("parallel",),
            vmem_limit_bytes=vmem_limit,
        ),
        input_output_aliases=alias,
    )(x2, pe2)

    return out2.reshape(batch, height, width, d_model)


# Donating version: the aliased output genuinely reuses x's buffer (no defensive
# copy).  Callers must NOT reuse x after the call.
positional_encoding_2d = jax.jit(_forward, donate_argnums=(0,))
# Non-donating version for callers that need x afterwards (XLA may copy x).
positional_encoding_2d_ref_safe = jax.jit(_forward)


if __name__ == "__main__":
    d_model = 32
    max_len = 32                 # module default
    batch, height, width = 2, 16, 16

    pe = build_pe_2d(d_model=d_model, max_len=max_len, temperature=10000.0)

    key = jax.random.PRNGKey(0)
    x = jax.random.normal(key, (batch, height, width, d_model), dtype=jnp.float32)

    # Reference (plain JAX, same semantics as the PyTorch forward in eval mode).
    # Computed BEFORE the kernel call: the kernel donates + aliases x's buffer.
    ref = jax.block_until_ready(x + pe[None, :height, :width, :])

    out = positional_encoding_2d(x, pe)
    out = jax.block_until_ready(out)

    assert out.shape == (batch, height, width, d_model)
    assert out.dtype == jnp.float32
    assert jnp.allclose(out, ref, atol=1e-6), "mismatch vs reference"

    print("KERNEL_OK")
</pallas_src>

<mosaic_0001>
module attributes {stable_mosaic.version = 11 : i64} {
  func.func @kernel(%arg0: i32, %arg1: memref<8x512xf32, #tpu.memory_space<vmem>>, %arg2: memref<16x512xf32, #tpu.memory_space<vmem>>, %arg3: memref<8x512xf32, #tpu.memory_space<vmem>>) attributes {dimension_semantics = [#tpu.dimension_semantics<parallel>], iteration_bounds = array<i64: 4>, scalar_prefetch = 0 : i64, scratch_operands = 0 : i64, tpu.core_type = #tpu.core_type<tc>, window_params = [{transform_indices = @transform_0, window_bounds = array<i64: 8, 512>}, {pipeline_mode = #tpu.pipeline_mode<synchronous>, transform_indices = @transform_1, window_bounds = array<i64: 16, 512>}, {transform_indices = @transform_2, window_bounds = array<i64: 8, 512>}]} {
    %c8_i32 = arith.constant 8 : i32
    %0 = arith.muli %arg0, %c8_i32 : i32
    %c16_i32 = arith.constant 16 : i32
    %c0_i32 = arith.constant 0 : i32
    %1 = arith.cmpi eq, %c16_i32, %c0_i32 : i32
    %c1_i32 = arith.constant 1 : i32
    %2 = arith.select %1, %c1_i32, %c16_i32 : i32
    %3 = arith.remsi %0, %2 : i32
    %c0_i32_0 = arith.constant 0 : i32
    %4 = arith.cmpi ne, %3, %c0_i32_0 : i32
    %c0_i32_1 = arith.constant 0 : i32
    %5 = arith.cmpi slt, %3, %c0_i32_1 : i32
    %c0_i32_2 = arith.constant 0 : i32
    %6 = arith.cmpi slt, %2, %c0_i32_2 : i32
    %7 = arith.xori %5, %6 : i1
    %8 = arith.andi %7, %4 : i1
    %9 = arith.addi %3, %2 : i32
    %10 = arith.select %8, %9, %3 : i32
    %11 = tpu.assume_multiple %10, 8 : i32
    %c0 = arith.constant 0 : index
    %c0_3 = arith.constant 0 : index
    %12 = vector.load %arg1[%c0, %c0_3] : memref<8x512xf32, #tpu.memory_space<vmem>>, vector<8x512xf32>
    %13 = arith.index_cast %11 : i32 to index
    %c0_4 = arith.constant 0 : index
    %14 = vector.load %arg2[%13, %c0_4] : memref<16x512xf32, #tpu.memory_space<vmem>>, vector<8x512xf32>
    %15 = arith.addf %12, %14 : vector<8x512xf32>
    %c0_5 = arith.constant 0 : index
    %c0_6 = arith.constant 0 : index
    %16 = vector.load %arg3[%c0_5, %c0_6] : memref<8x512xf32, #tpu.memory_space<vmem>>, vector<8x512xf32>
    tpu.vector_store %arg3[%c0_5, %c0_6], %15 {strides = array<i32>} : memref<8x512xf32, #tpu.memory_space<vmem>>, vector<8x512xf32>,
    return
  }
  func.func @transform_0(%arg0: i32) -> (i32, i32) {
    %c0_i32 = arith.constant 0 : i32
    %c0_i32_0 = arith.constant 0 : i32
    return %arg0, %c0_i32 : i32, i32
  }
  func.func @transform_1(%arg0: i32) -> (i32, i32) {
    %c0_i32 = arith.constant 0 : i32
    %c0_i32_0 = arith.constant 0 : i32
    %c0_i32_1 = arith.constant 0 : i32
    return %c0_i32, %c0_i32_0 : i32, i32
  }
  func.func @transform_2(%arg0: i32) -> (i32, i32) {
    %c0_i32 = arith.constant 0 : i32
    %c0_i32_0 = arith.constant 0 : i32
    return %arg0, %c0_i32 : i32, i32
  }
}

</mosaic_0001>

<bundles_post_ra>
// kernel: _forward.1
= control target key start
LH: loop header
LB: loop body
LE: loop exit
PB: predicated region body
PF: predicated region fallthrough
CT: control target
= control target key end

     0   :  { %s286_s9 = smov 0   ;;  %s306_s0 = inlined_call_operand.vmem [shape: f32[32,512], index: 0, kind: input, shape index: {}, may-alias: {0,2}]   ;;  %s307_s1 = inlined_call_operand.vmem [shape: f32[16,512], index: 1, kind: input, shape index: {}]   ;;  %s308_s2 = inlined_call_operand.vmem [shape: f32[32,512], index: 2, kind: output, shape index: {}, may-alias: {0,2}]  }
   0x1 LB: > { %s235_s10 = sadd.s32 4294967295, %s269_s9   ;;  %p239_p0 = scmp.ge.s32.totalorder %s269_s9, 1  ;;  %s269_s9 = sphi %s286_s9, %s12_s9  }
   0x2   : > { %p112_p1 = scmp.lt.s32.totalorder %s269_s9, 5 }
   0x4   : > { %p113_p2 = pnand %p239_p0, %p112_p1 }
   0x5   : > { %p134_p3 = scmp.lt.s32.totalorder (!%p113_p2), %s235_s10, 3  ;;  %s244_s11 = sshll.u32 (!%p113_p2), %s235_s10, 3 }
   0x6   : > { %116 = sbr.rel (%p113_p2) target bundleno = 25 (0x19), region = 28  ;;  %s146_s12 = ssub.s32 (!%p113_p2), 0, %s244_s11 }
   0x7   : > { %p145_p4 = scmp.lt.s32.totalorder (!%p113_p2), %s244_s11, 0  ;;  %s245_s13 = smin.u32 (!%p113_p2), %s244_s11, %s146_s12 }
   0x8   : > { %s148_s14 = sand.u32 (!%p113_p2), 15, %s245_s13  }
   0x9   : > { %s149_s16 = ssub.s32 (!%p113_p2), 0, %s148_s14 }
   0xb   : > { %s310_s10 = smov (!%p134_p3, %s235_s10), 3  ;;  %s312_s16 = smov (!%p145_p4, %s149_s16), %s148_s14 }
   0xc   : > { %s252_s15 = sshll.u32 %s310_s10, 5  ;;  %p247_p5 = scmp.lt.s32.totalorder %s312_s16, 0 }
   0xd   : > { %s155_s17 = sadd.s32 16, %s312_s16  ;;  %s138_s20 = scalar_lea.vmem %s306_s0, %s252_s15 }
   0xe   : > { %s314_s17 = smov (!%p247_p5, %s155_s17), %s312_s16  ;;  %v157_v0 = vld [vmem:[%s138_s20] sm:$0xff]  ;;  %v158_v1 = vld [vmem:[%s138_s20 + $0x8] sm:$0xff]  ;;  %v159_v2 = vld [vmem:[%s138_s20 + $0x10] sm:$0xff]  ;;  %s143_s28 = scalar_lea.vmem %s308_s2, %s252_s15 }
   0xf   : > { %s161_s21 = sshra.s32 %s314_s17, 3  ;;  %v160_v3 = vld [vmem:[%s138_s20 + $0x18] sm:$0xff] }
  0x10   : > { %s254_s22 = sshll.u32 %s161_s21, 5 }
  0x11   : > { %s165_s25 = scalar_lea.vmem %s307_s1, %s254_s22 }
  0x12   : > { %v166_v4 = vld [vmem:[%s165_s25] sm:$0xff]  ;;  %v167_v5 = vld [vmem:[%s165_s25 + $0x8] sm:$0xff]  ;;  %v168_v6 = vld [vmem:[%s165_s25 + $0x10] sm:$0xff] }
  0x13   : > { %v169_v7 = vld [vmem:[%s165_s25 + $0x18] sm:$0xff]  ;;  %v170_v8 = vadd.f32 %v166_v4, %v157_v0  ;;  %v171_v9 = vadd.f32 %v167_v5, %v158_v1  ;;  %v172_v10 = vadd.f32 %v168_v6, %v159_v2 }
  0x14   : > { %v173_v11 = vadd.f32 %v169_v7, %v160_v3 }
  0x15   : > { %174 = vst [vmem:[%s143_s28] sm:$0xff] %v170_v8 }
  0x16   : > { %175 = vst [vmem:[%s143_s28 + $0x8] sm:$0xff] %v171_v9 }
  0x17   : > { %176 = vst [vmem:[%s143_s28 + $0x10] sm:$0xff] %v172_v10 }
  0x18   : > { %177 = vst [vmem:[%s143_s28 + $0x18] sm:$0xff] %v173_v11 }
  0x19 PF: > { %s12_s9 = sadd.s32 1, %s269_s9  }
  0x1a   : > { %p9_p6 = scmp.ge.s32.totalorder %s12_s9, 6  }
  0x1c   :  { %11 = sbr.rel (!%p9_p6) target bundleno = 1 (0x1), region = 59 }

</bundles_post_ra>
